<compile_context>
chip_gen: v5e
topology: v5e:2x2
jax: 0.10.0
libtpu: 0.0.40
codegen_flags: <defaults>
</compile_context>

<pallas_src>
import functools

import jax
import jax.numpy as jnp
from jax.experimental import pallas as pl
from jax.experimental.pallas import tpu as pltpu


def _ccot_partial_kernel(logits_ref, labels_ref, out_ref, *, total_rows):
    """Per-batch-tile partial sums for cross entropy and complement entropy."""
    tile = pl.program_id(0)

    logits = logits_ref[...].astype(jnp.float32)         # (TB, C)
    labels = labels_ref[...]                             # (TB, 1) int32
    tb, c = logits.shape

    # Row-validity mask: the last tile may be batch-padded by the wrapper.
    row = jax.lax.broadcasted_iota(jnp.int32, (tb, 1), 0) + tile * tb
    valid = (row < total_rows).astype(jnp.float32)       # (TB, 1)

    # One-hot of the true class via iota compare (replaces gather / scatter_).
    col = jax.lax.broadcasted_iota(jnp.int32, (tb, c), 1)
    onehot = col == labels                               # (TB, C) bool

    # Numerically-stable softmax / log-softmax pieces.
    m = jnp.max(logits, axis=1, keepdims=True)
    z = logits - m
    e = jnp.exp(z)                                       # only per-element transcendental
    s = jnp.sum(e, axis=1, keepdims=True)
    log_s = jnp.log(s)                                   # per-row
    p = e * (1.0 / s)                                    # softmax (per-row reciprocal)
    logp = z - log_s                                     # log-softmax, no per-element log

    # True-class probability / log-probability per row.
    z_y = jnp.sum(jnp.where(onehot, z, 0.0), axis=1, keepdims=True)
    logp_y = z_y - log_s                                 # (TB, 1)
    Yg = jnp.sum(jnp.where(onehot, p, 0.0), axis=1, keepdims=True)

    # --- Cross entropy partial: sum over valid rows of -log p_true.
    ce_part = -jnp.sum(logp_y * valid)

    # --- Complement entropy partial (algebraic rewrite; 1/Yg_ factored out so the
    #     per-element divide of the original formula disappears entirely).
    Yg_ = 1.0 - Yg + 1e-7
    inv_yg_ = 1.0 / Yg_                                  # per-row only (exact, cheap)
    s_plogp = jnp.sum(p * logp, axis=1, keepdims=True)
    row_cot = inv_yg_ * (s_plogp - Yg * logp_y - (1.0 - Yg) * jnp.log(Yg_))
    cot_part = jnp.sum(row_cot * valid)

    # Lane-dense (8, 128) partial block: sublane 0 = CE sum, sublane 1 = COT sum.
    sub = jax.lax.broadcasted_iota(jnp.int32, (8, 128), 0)
    out_ref[...] = jnp.where(sub == 0, ce_part,
                             jnp.where(sub == 1, cot_part, 0.0))


def complement_cross_entropy(y_hat, y, *, gamma=5.0, block_rows=1024):
    """Returns l1 + gamma * l2: l1 = mean cross entropy, l2 = complement entropy."""
    B, C = y_hat.shape
    tb = min(block_rows, B)
    num_tiles = pl.cdiv(B, tb)
    b_pad = num_tiles * tb

    y2d = y.reshape(B, 1).astype(jnp.int32)
    if b_pad != B:
        # Pad batch to a tile multiple with benign rows; masked out inside the kernel.
        y_hat = jnp.pad(y_hat, ((0, b_pad - B), (0, 0)))
        y2d = jnp.pad(y2d, ((0, b_pad - B), (0, 0)))

    kernel = functools.partial(_ccot_partial_kernel, total_rows=B)
    itemsize = jnp.dtype(y_hat.dtype).itemsize

    partials = pl.pallas_call(
        kernel,
        out_shape=jax.ShapeDtypeStruct((8 * num_tiles, 128), jnp.float32),
        grid=(num_tiles,),
        in_specs=[
            pl.BlockSpec((tb, C), lambda i: (i, 0)),
            pl.BlockSpec((tb, 1), lambda i: (i, 0)),
        ],
        out_specs=pl.BlockSpec((8, 128), lambda i: (i, 0)),
        compiler_params=pltpu.CompilerParams(
            dimension_semantics=("parallel",),          # v7x: shard tiles over 2 TCs
            vmem_limit_bytes=32 * 1024 * 1024,          # headroom above v5e's 16 MiB default
        ),
        cost_estimate=pl.CostEstimate(
            flops=10 * b_pad * C,
            transcendentals=b_pad * C + 3 * b_pad,      # exp per element + per-row logs
            bytes_accessed=b_pad * C * itemsize + b_pad * 4 + num_tiles * 8 * 128 * 4,
        ),
    )(y_hat, y2d)

    ce_sum = jnp.sum(partials[0::8, 0])
    cot_sum = jnp.sum(partials[1::8, 0])
    l1 = ce_sum / float(B)                              # nn.CrossEntropyLoss (mean)
    l2 = cot_sum / (float(B) * float(C))                # ComplementEntropy normalization
    return l1 + gamma * l2


def _reference(y_hat, y, gamma=5.0):
    # Pure-JAX mirror of the PyTorch ComplementCrossEntropy module.
    B, C = y_hat.shape
    logp = jax.nn.log_softmax(y_hat, axis=1)
    l1 = jnp.mean(-jnp.take_along_axis(logp, y.reshape(B, 1), axis=1))
    p = jax.nn.softmax(y_hat, axis=1)
    Yg = jnp.take_along_axis(p, y.reshape(B, 1), axis=1)
    Yg_ = 1.0 - Yg + 1e-7
    Px = p / Yg_
    Px_log = jnp.log(Px + 1e-10)
    zerohot = 1.0 - jax.nn.one_hot(y, C, dtype=p.dtype)
    l2 = jnp.sum(Px * Px_log * zerohot) / (float(B) * float(C))
    return l1 + gamma * l2


if __name__ == "__main__":
    num_classes = 200   # module default
    batch = 8
    gamma = 5.0         # module default

    key = jax.random.PRNGKey(0)
    k_logits, k_labels = jax.random.split(key)
    y_hat = jax.random.normal(k_logits, (batch, num_classes), dtype=jnp.float32)
    y = jax.random.randint(k_labels, (batch,), 0, num_classes, dtype=jnp.int32)

    result = complement_cross_entropy(y_hat, y, gamma=gamma)
    jax.block_until_ready(result)

    ref = _reference(y_hat, y, gamma=gamma)
    assert jnp.allclose(result, ref, rtol=1e-5, atol=1e-4), (result, ref)

    print("KERNEL_OK")
</pallas_src>

<mosaic_0001>
module attributes {stable_mosaic.version = 11 : i64} {
  func.func @_ccot_partial_kernel(%arg0: i32, %arg1: memref<8x200xf32, #tpu.memory_space<vmem>>, %arg2: memref<8x1xi32, #tpu.memory_space<vmem>>, %arg3: memref<8x128xf32, #tpu.memory_space<vmem>>) attributes {dimension_semantics = [#tpu.dimension_semantics<parallel>], iteration_bounds = array<i64: 1>, scalar_prefetch = 0 : i64, scratch_operands = 0 : i64, tpu.core_type = #tpu.core_type<tc>, window_params = [{transform_indices = @transform_0, window_bounds = array<i64: 8, 200>}, {transform_indices = @transform_1, window_bounds = array<i64: 8, 1>}, {transform_indices = @transform_2, window_bounds = array<i64: 8, 128>}]} {
    %c0 = arith.constant 0 : index
    %c0_0 = arith.constant 0 : index
    %0 = vector.load %arg1[%c0, %c0_0] : memref<8x200xf32, #tpu.memory_space<vmem>>, vector<8x200xf32>
    %c0_1 = arith.constant 0 : index
    %c0_2 = arith.constant 0 : index
    %1 = vector.load %arg2[%c0_1, %c0_2] : memref<8x1xi32, #tpu.memory_space<vmem>>, vector<8x1xi32>
    %2 = tpu.iota {dimensions = array<i32: 0>} : vector<8x1xi32>
    %c8_i32 = arith.constant 8 : i32
    %3 = arith.muli %arg0, %c8_i32 : i32
    %4 = vector.broadcast %3 : i32 to vector<8x1xi32>
    %5 = arith.addi %2, %4 : vector<8x1xi32>
    %c8_i32_3 = arith.constant 8 : i32
    %6 = vector.broadcast %c8_i32_3 : i32 to vector<8x1xi32>
    %7 = arith.cmpi slt, %5, %6 : vector<8x1xi32>
    %8 = arith.extui %7 : vector<8x1xi1> to vector<8x1xi32>
    %9 = arith.sitofp %8 : vector<8x1xi32> to vector<8x1xf32>
    %10 = tpu.iota {dimensions = array<i32: 1>} : vector<8x200xi32>
    %11 = vector.broadcast %1 : vector<8x1xi32> to vector<8x200xi32>
    %12 = arith.cmpi eq, %10, %11 : vector<8x200xi32>
    %cst = arith.constant dense<0xFF800000> : vector<8xf32>
    %13 = vector.multi_reduction <maximumf>, %0, %cst [1] : vector<8x200xf32> to vector<8xf32>
    %14 = vector.shape_cast %13 : vector<8xf32> to vector<8x1xf32>
    %15 = vector.broadcast %14 : vector<8x1xf32> to vector<8x200xf32>
    %16 = arith.subf %0, %15 : vector<8x200xf32>
    %17 = math.exp %16 : vector<8x200xf32>
    %cst_4 = arith.constant dense<0.000000e+00> : vector<8xf32>
    %18 = vector.multi_reduction <add>, %17, %cst_4 [1] : vector<8x200xf32> to vector<8xf32>
    %19 = vector.shape_cast %18 : vector<8xf32> to vector<8x1xf32>
    %20 = math.log %19 : vector<8x1xf32>
    %cst_5 = arith.constant 1.000000e+00 : f32
    %21 = vector.broadcast %cst_5 : f32 to vector<8x1xf32>
    %22 = arith.divf %21, %19 : vector<8x1xf32>
    %23 = vector.broadcast %22 : vector<8x1xf32> to vector<8x200xf32>
    %24 = arith.mulf %17, %23 : vector<8x200xf32>
    %25 = vector.broadcast %20 : vector<8x1xf32> to vector<8x200xf32>
    %26 = arith.subf %16, %25 : vector<8x200xf32>
    %cst_6 = arith.constant 0.000000e+00 : f32
    %27 = vector.broadcast %cst_6 : f32 to vector<8x200xf32>
    %28 = arith.select %12, %16, %27 : vector<8x200xi1>, vector<8x200xf32>
    %cst_7 = arith.constant dense<0.000000e+00> : vector<8xf32>
    %29 = vector.multi_reduction <add>, %28, %cst_7 [1] : vector<8x200xf32> to vector<8xf32>
    %30 = vector.shape_cast %29 : vector<8xf32> to vector<8x1xf32>
    %31 = arith.subf %30, %20 : vector<8x1xf32>
    %cst_8 = arith.constant 0.000000e+00 : f32
    %32 = vector.broadcast %cst_8 : f32 to vector<8x200xf32>
    %33 = arith.select %12, %24, %32 : vector<8x200xi1>, vector<8x200xf32>
    %cst_9 = arith.constant dense<0.000000e+00> : vector<8xf32>
    %34 = vector.multi_reduction <add>, %33, %cst_9 [1] : vector<8x200xf32> to vector<8xf32>
    %35 = vector.shape_cast %34 : vector<8xf32> to vector<8x1xf32>
    %36 = arith.mulf %31, %9 : vector<8x1xf32>
    %37 = vector.shape_cast %36 : vector<8x1xf32> to vector<1x8x1xf32>
    %cst_10 = arith.constant dense<0.000000e+00> : vector<1xf32>
    %38 = vector.multi_reduction <add>, %37, %cst_10 [1, 2] : vector<1x8x1xf32> to vector<1xf32>
    %39 = vector.shape_cast %38 : vector<1xf32> to vector<1x1x1xf32>
    %40 = vector.extract %39[0, 0, 0] : f32 from vector<1x1x1xf32>
    %cst_11 = arith.constant 0.000000e+00 : f32
    %41 = arith.subf %cst_11, %40 : f32
    %cst_12 = arith.constant 1.000000e+00 : f32
    %42 = vector.broadcast %cst_12 : f32 to vector<8x1xf32>
    %43 = arith.subf %42, %35 : vector<8x1xf32>
    %cst_13 = arith.constant 1.000000e-07 : f32
    %44 = vector.broadcast %cst_13 : f32 to vector<8x1xf32>
    %45 = arith.addf %43, %44 : vector<8x1xf32>
    %cst_14 = arith.constant 1.000000e+00 : f32
    %46 = vector.broadcast %cst_14 : f32 to vector<8x1xf32>
    %47 = arith.divf %46, %45 : vector<8x1xf32>
    %48 = arith.mulf %24, %26 : vector<8x200xf32>
    %cst_15 = arith.constant dense<0.000000e+00> : vector<8xf32>
    %49 = vector.multi_reduction <add>, %48, %cst_15 [1] : vector<8x200xf32> to vector<8xf32>
    %50 = vector.shape_cast %49 : vector<8xf32> to vector<8x1xf32>
    %51 = arith.mulf %35, %31 : vector<8x1xf32>
    %52 = arith.subf %50, %51 : vector<8x1xf32>
    %cst_16 = arith.constant 1.000000e+00 : f32
    %53 = vector.broadcast %cst_16 : f32 to vector<8x1xf32>
    %54 = arith.subf %53, %35 : vector<8x1xf32>
    %55 = math.log %45 : vector<8x1xf32>
    %56 = arith.mulf %54, %55 : vector<8x1xf32>
    %57 = arith.subf %52, %56 : vector<8x1xf32>
    %58 = arith.mulf %47, %57 : vector<8x1xf32>
    %59 = arith.mulf %58, %9 : vector<8x1xf32>
    %60 = vector.shape_cast %59 : vector<8x1xf32> to vector<1x8x1xf32>
    %cst_17 = arith.constant dense<0.000000e+00> : vector<1xf32>
    %61 = vector.multi_reduction <add>, %60, %cst_17 [1, 2] : vector<1x8x1xf32> to vector<1xf32>
    %62 = vector.shape_cast %61 : vector<1xf32> to vector<1x1x1xf32>
    %63 = vector.extract %62[0, 0, 0] : f32 from vector<1x1x1xf32>
    %64 = tpu.iota {dimensions = array<i32: 0>} : vector<8x128xi32>
    %c0_i32 = arith.constant 0 : i32
    %65 = vector.broadcast %c0_i32 : i32 to vector<8x128xi32>
    %66 = arith.cmpi eq, %64, %65 : vector<8x128xi32>
    %c1_i32 = arith.constant 1 : i32
    %67 = vector.broadcast %c1_i32 : i32 to vector<8x128xi32>
    %68 = arith.cmpi eq, %64, %67 : vector<8x128xi32>
    %cst_18 = arith.constant 0.000000e+00 : f32
    %69 = vector.broadcast %63 : f32 to vector<8x128xf32>
    %70 = vector.broadcast %cst_18 : f32 to vector<8x128xf32>
    %71 = arith.select %68, %69, %70 : vector<8x128xi1>, vector<8x128xf32>
    %72 = vector.broadcast %41 : f32 to vector<8x128xf32>
    %73 = arith.select %66, %72, %71 : vector<8x128xi1>, vector<8x128xf32>
    %c0_19 = arith.constant 0 : index
    %c0_20 = arith.constant 0 : index
    %74 = vector.load %arg3[%c0_19, %c0_20] : memref<8x128xf32, #tpu.memory_space<vmem>>, vector<8x128xf32>
    tpu.vector_store %arg3[%c0_19, %c0_20], %73 {strides = array<i32>} : memref<8x128xf32, #tpu.memory_space<vmem>>, vector<8x128xf32>,
    return
  }
  func.func @transform_0(%arg0: i32) -> (i32, i32) {
    %c0_i32 = arith.constant 0 : i32
    %c0_i32_0 = arith.constant 0 : i32
    return %arg0, %c0_i32 : i32, i32
  }
  func.func @transform_1(%arg0: i32) -> (i32, i32) {
    %c0_i32 = arith.constant 0 : i32
    %c0_i32_0 = arith.constant 0 : i32
    return %arg0, %c0_i32 : i32, i32
  }
  func.func @transform_2(%arg0: i32) -> (i32, i32) {
    %c0_i32 = arith.constant 0 : i32
    %c0_i32_0 = arith.constant 0 : i32
    return %arg0, %c0_i32 : i32, i32
  }
}

</mosaic_0001>

<bundles_post_ra>
// kernel: tpu_custom_call.1
= control target key start
LH: loop header
LB: loop body
LE: loop exit
PB: predicated region body
PF: predicated region fallthrough
CT: control target
= control target key end

     0   :  { %7 = vsyncpa [#allocation3], 0  ;;  %s285_s0 = inlined_call_operand.hbm [shape: f32[8,200], index: 0, kind: input, shape index: {}]   ;;  %s286_s1 = inlined_call_operand.vmem [shape: s32[8,1], index: 1, kind: input, shape index: {}]   ;;  %s287_s2 = inlined_call_operand.hbm [shape: f32[8,128], index: 2, kind: output, shape index: {}]  }
   0x1   :  { %8 = vsyncpa [#allocation4], 0  ;;  %s14_s11 = sshll.u32 %s285_s0, 4  ;;  %s245_s12 = smov [#allocation2]   ;;  %s15_s11 = int_to_ptr.hbm [resolvable:$true] %s14_s11 }
   0x2   :  { %s16_s13 = sshll.u32 %s245_s12, 4  ;;  %s17_s13 = int_to_ptr.vmem [resolvable:$true] %s16_s13 }
   0x3   :  { %19 = dma.hbm_to_vmem [thread:$0]  %s15_s11, 256, %s17_s13, [#allocation3]  }
   0x4   :  { %241 = dma.done.wait [#allocation3], 256  }
   0x5   :  { %242 = vsyncadd [#allocation3], 4294967040  ;;  %v246_v0 = vmov 0   ;;  %vm45_vm0 = vcmask 588800   ;;  %v26_v1 = vld [vmem:[#allocation2] sm:$0xff]  ;;  %v27_v2 = vld [vmem:[#allocation2 + $0x8] sm:$0xff]  ;;  %v29_v6 = vlaneseq }
   0x6   :  { %179 = vset.pattern.permute.xlu1 %v246_v0  ;;  %180 = vset.pattern.permute.xlu0 %v246_v0  ;;  %v28_v3 = vld [vmem:[%s286_s1] sm:$0xff]  ;;  %v46_v4 = vsel %vm45_vm0, %v27_v2, -inf  ;;  %vm95_vm3 = vcmask 7168   ;;  %s247_s16 = smov [#allocation5]   ;;  %s162_s20 = sshll.u32 %s287_s2, 4  ;;  %s163_s20 = int_to_ptr.hbm [resolvable:$true] %s162_s20 }
   0x7   :  { %41 = vperm.xlu1 %179, %v28_v3   ;;  %v47_v5 = vmax.f32 %v26_v1, %v46_v4  ;;  %v38_v7 = vand.u32 127, %v29_v6  ;;  %s160_s17 = sshll.u32 %s247_s16, 4  ;;  %s161_s17 = int_to_ptr.vmem [resolvable:$true] %s160_s17 }
   0x9   :  { %48 = vmax.xlane.f32.xlu0 %v47_v5  ;;  %v39_v8 = vadd.s32 128, %v38_v7 }
  0x79   :  { %v42_v9 = vpop.permute.xlu1 %41 }
  0x7a   :  { %vm43_vm1 = vcmp.eq.s32.totalorder %v38_v7, %v42_v9  ;;  %vm44_vm2 = vcmp.eq.s32.totalorder %v39_v8, %v42_v9 }
  0x7c   :  { %v49_v10 = vpop.xlane.xlu0 %48 }
  0x7d   :  { %v50_v11 = vsub.f32 %v26_v1, %v49_v10  ;;  %v51_v12 = vsub.f32 %v27_v2, %v49_v10 }
  0x7f   :  { %v52_v13 = vmul.f32 1.442695, %v50_v11  ;;  %v54_v14 = vmul.f32 1.442695, %v51_v12  ;;  %v81_v15 = vsel %vm43_vm1, %v50_v11, 0.0  ;;  %v82_v16 = vsel %vm44_vm2, %v51_v12, 0.0 }
  0x80   :  { %v83_v17 = vsel %vm45_vm0, %v82_v16, 0.0 }
  0x81   :  { %181 = vpow2.f32 %v52_v13  ;;  %v84_v18 = vadd.f32 %v83_v17, %v81_v15 }
  0x82   :  { %183 = vpow2.f32 %v54_v14 }
  0x83   :  { %85 = vadd.xlane.f32.xlu2 %v84_v18 }
  0x87   :  { %v182_v19 = vpop.eup %181 }
  0x88   :  { %v184_v20 = vpop.eup %183 }
  0x89   :  { %v56_v21 = vsel %vm45_vm0, %v184_v20, 0.0 }
  0x8a   :  { %v57_v22 = vadd.f32 %v182_v19, %v56_v21 }
  0x8c   :  { %58 = vadd.xlane.f32.xlu0 %v57_v22 }
  0xf6   :  { %v86_v28 = vpop.xlane.xlu2 %85 }
  0xff   :  { %v59_v23 = vpop.xlane.xlu0 %58 }
 0x100   :  { %185 = vrcp.f32 %v59_v23  ;;  %v73_v31 = vand.u32 2147483648, %v59_v23  ;;  %v71_v33 = vand.u32 2147483647, %v59_v23  ;;  %vm67_vm5 = vweird.f32 %v59_v23 }
 0x101   :  { %187 = vlog2.f32 %v59_v23 }
 0x102   :  { %v74_v36 = vor.u32 1.1754944e-38, %v73_v31  ;;  %vm72_vm7 = vcmp.eq.f32.partialorder %v71_v33, 8.507059e+37 }
 0x106   :  { %v186_v24 = vpop.eup %185 }
 0x107   :  { %v188_v25 = vpop.eup %187  ;;  %v63_v26 = vmul.f32 %v186_v24, %v59_v23  ;;  %vm68_vm4 = vweird.f32 %v186_v24 }
 0x108   :  { %v61_v27 = vmul.f32 0.6931472, %v188_v25  ;;  %vm69_vm6 = vmor %vm67_vm5, %vm68_vm4 }
 0x109   :  { %v64_v29 = vsub.f32 1.0, %v63_v26 }
 0x10a   :  { %v87_v30 = vsub.f32 %v86_v28, %v61_v27  ;;  %v79_v41 = vsub.f32 %v50_v11, %v61_v27  ;;  %v80_v42 = vsub.f32 %v51_v12, %v61_v27 }
 0x10b   :  { %v65_v32 = vmul.f32 %v186_v24, %v64_v29 }
 0x10c   :  { %v96_v34 = vsel %vm95_vm3, %v87_v30, 0.0 }
 0x10d   :  { %97 = vadd.xlane.f32.xlu0 %v96_v34  ;;  %v66_v35 = vadd.f32 %v186_v24, %v65_v32 }
 0x10f   :  { %v70_v37 = vsel %vm69_vm6, %v186_v24, %v66_v35  ;;  %v30_v24 = vshrl.u32 %v29_v6, 7 }
 0x110   :  { %v75_v38 = vsel %vm72_vm7, %v74_v36, %v70_v37 }
 0x111   :  { %v77_v39 = vmul.f32 %v182_v19, %v75_v38  ;;  %v78_v40 = vmul.f32 %v184_v20, %v75_v38  ;;  %vm149_vm12 = vcmp.eq.s32.totalorder %v30_v24, 1  ;;  %vm148_vm13 = vcmp.eq.s32.totalorder %v30_v24, 0 }
 0x113   :  { %v88_v43 = vsel %vm43_vm1, %v77_v39, 0.0  ;;  %v89_v44 = vsel %vm44_vm2, %v78_v40, 0.0  ;;  %v124_v45 = vmul.f32 %v79_v41, %v77_v39  ;;  %v125_v46 = vmul.f32 %v80_v42, %v78_v40 }
 0x114   :  { %v90_v47 = vsel %vm45_vm0, %v89_v44, 0.0 }
 0x115   :  { %v91_v48 = vadd.f32 %v90_v47, %v88_v43  ;;  %v126_v49 = vsel %vm45_vm0, %v125_v46, 0.0 }
 0x116   :  { %v127_v50 = vadd.f32 %v126_v49, %v124_v45 }
 0x117   :  { %92 = vadd.xlane.f32.xlu1 %v91_v48 }
 0x118   :  { %128 = vadd.xlane.f32.xlu2 %v127_v50 }
 0x180   :  { %v98_v51 = vpop.xlane.xlu0 %97 }
 0x181   :  { %v99_v52 = vrot.slane %v98_v51, 4 }
 0x183   :  { %v100_v53 = vadd.f32 %v99_v52, %v98_v51 }
 0x185   :  { %v101_v54 = vrot.slane %v100_v53, 2 }
 0x187   :  { %v102_v55 = vadd.f32 %v101_v54, %v100_v53 }
 0x189   :  { %v103_v56 = vrot.slane %v102_v55, 1 }
 0x18a   :  { %v93_v57 = vpop.xlane.xlu1 %92 }
 0x18b   :  { %v107_v58 = vsub.f32 1.0, %v93_v57  ;;  %v104_v59 = vadd.f32 %v103_v56, %v102_v55  ;;  %v130_v1 = vmul.f32 %v93_v57, %v87_v30  ;;  %v129_v3 = vpop.xlane.xlu2 %128 }
 0x18d   :  { %v108_v60 = vadd.f32 1e-07, %v107_v58  ;;  %172 = vpush %v104_v59  ;;  %v131_v9 = vsub.f32 %v129_v3, %v130_v1 }
 0x18f   :  { %189 = vrcp.f32 %v108_v60  ;;  %v120_v4 = vand.u32 2147483648, %v108_v60  ;;  %v118_v8 = vand.u32 2147483647, %v108_v60  ;;  %vm114_vm9 = vweird.f32 %v108_v60 }
 0x190   :  { %191 = vlog2.f32 %v108_v60 }
 0x191   :  { %v121_v11 = vor.u32 1.1754944e-38, %v120_v4  ;;  %vm119_vm11 = vcmp.eq.f32.partialorder %v118_v8, 8.507059e+37 }
 0x195   :  { %v190_v61 = vpop.eup %189 }
 0x196   :  { %v192_v62 = vpop.eup %191  ;;  %v110_v63 = vmul.f32 %v190_v61, %v108_v60  ;;  %vm115_vm8 = vweird.f32 %v190_v61 }
 0x197   :  { %v133_v0 = vmul.f32 0.6931472, %v192_v62  ;;  %vm116_vm10 = vmor %vm114_vm9, %vm115_vm8 }
 0x198   :  { %v111_v2 = vsub.f32 1.0, %v110_v63 }
 0x199   :  { %v134_v5 = vmul.f32 %v133_v0, %v107_v58 }
 0x19a   :  { %v112_v7 = vmul.f32 %v190_v61, %v111_v2 }
 0x19b   :  { %v135_v12 = vsub.f32 %v131_v9, %v134_v5 }
 0x19c   :  { %v113_v10 = vadd.f32 %v190_v61, %v112_v7 }
 0x19e   :  { %v117_v13 = vsel %vm116_vm10, %v190_v61, %v113_v10 }
 0x19f   :  { %v122_v14 = vsel %vm119_vm11, %v121_v11, %v117_v13 }
 0x1a0   :  { %v136_v15 = vmul.f32 %v135_v12, %v122_v14 }
 0x1a2   :  { %v138_v16 = vsel %vm95_vm3, %v136_v15, 0.0 }
 0x1a3   :  { %139 = vadd.xlane.f32.xlu2 %v138_v16 }
 0x1be   :  { %s173_s0 = spop %172 }
 0x1bf   :  { %s106_s1 = ssub.f32 0.0, %s173_s0 }
 0x1c1   :  { %v152_v26 = vstv %s106_s1 }
 0x216   :  { %v140_v17 = vpop.xlane.xlu2 %139 }
 0x217   :  { %v141_v18 = vrot.slane %v140_v17, 4 }
 0x219   :  { %v142_v19 = vadd.f32 %v141_v18, %v140_v17 }
 0x21b   :  { %v143_v20 = vrot.slane %v142_v19, 2 }
 0x21d   :  { %v144_v21 = vadd.f32 %v143_v20, %v142_v19 }
 0x21f   :  { %v145_v22 = vrot.slane %v144_v21, 1 }
 0x221   :  { %v146_v23 = vadd.f32 %v145_v22, %v144_v21 }
 0x223   :  { %174 = vpush %v146_v23 }
 0x254   :  { %s175_s21 = spop %174 }
 0x255   :  { %v150_v25 = vstv %s175_s21 }
 0x256   :  { %v151_v27 = vsel %vm149_vm12, %v150_v25, 0.0 }
 0x257   :  { %v153_v28 = vsel %vm148_vm13, %v152_v26, %v151_v27 }
 0x258   :  { %154 = vst [vmem:[#allocation5] sm:$0xff] %v153_v28 }
 0x259   :  { %165 = dma.vmem_to_hbm [thread:$0]  %s161_s17, 128, %s163_s20, [#allocation4]  }
 0x25a   :  { %243 = dma.done.wait [#allocation4], 128  }
 0x25b   :  { %244 = vsyncadd [#allocation4], 4294967168 }
 0x25c   :  { %170 = vsyncpa [#allocation3], 1 }
 0x25d   :  { %171 = vsyncpa [#allocation4], 1 }

</bundles_post_ra>
